<compile_context>
chip_gen: v5e
topology: v5e:2x2
jax: 0.10.0
libtpu: 0.0.40
codegen_flags: <defaults>
</compile_context>

<pallas_src>
import jax
import jax.numpy as jnp
from jax.experimental import pallas as pl
from jax.experimental.pallas import tpu as pltpu


def _round_up(x, m):
    return (x + m - 1) // m * m


def _pad2(a, rows, cols):
    return jnp.pad(a, ((0, rows - a.shape[0]), (0, cols - a.shape[1])))


def fcm_kernel(x_ref, w1_ref, b1_ref, w2_ref, b2_ref, w3_ref, b3_ref, o_ref):
    # Layer 1: (tb, 784) @ (784, 256) -> f32 acc, +bias, ReLU
    h1 = jnp.dot(x_ref[...], w1_ref[...], preferred_element_type=jnp.float32)
    h1 = jnp.maximum(h1 + b1_ref[...], 0.0)
    # Layer 2: (tb, 256) @ (256, 256)
    h2 = jnp.dot(h1.astype(jnp.bfloat16), w2_ref[...],
                 preferred_element_type=jnp.float32)
    h2 = jnp.maximum(h2 + b2_ref[...], 0.0)
    # Layer 3: (tb, 256) @ (256, 128)
    h3 = jnp.dot(h2.astype(jnp.bfloat16), w3_ref[...],
                 preferred_element_type=jnp.float32)
    h3 = jnp.maximum(h3 + b3_ref[...], 0.0)
    o_ref[...] = h3.astype(o_ref.dtype)


def fcm_forward(x, params, *, tile_b=None):
    """x: (B, 784) float32. params: dict of w1,b1,w2,b2,w3,b3. Returns (B, 10) float32."""
    B, D = x.shape
    assert D == 784
    H, O = 200, 10
    HP, OP = 256, 128  # padded hidden / output lane widths (multiples of 128)

    # Batch tile: small batches -> one step; larger batches -> 256/512-row tiles
    # (128/256-aligned for the MXU, >=2 grid steps so v7x megacore shards, and
    #  the double-buffered x tile stays well under even v5e's 16 MiB scoped VMEM).
    if tile_b is None:
        if B <= 256:
            tile_b = _round_up(B, 16)
        elif B <= 1024:
            tile_b = 256
        else:
            tile_b = 512
    Bp = _round_up(B, tile_b)

    xp = x if Bp == B else jnp.pad(x, ((0, Bp - B), (0, 0)))
    xp = xp.astype(jnp.bfloat16)

    # One-time pad + cast of the weights/biases (zeros in the padded rows/cols
    # keep the extra lanes exactly zero through bias-add and ReLU).
    w1 = _pad2(params["w1"], D, HP).astype(jnp.bfloat16)
    w2 = _pad2(params["w2"], HP, HP).astype(jnp.bfloat16)
    w3 = _pad2(params["w3"], HP, OP).astype(jnp.bfloat16)
    b1 = jnp.pad(params["b1"], (0, HP - H)).reshape(1, HP).astype(jnp.float32)
    b2 = jnp.pad(params["b2"], (0, HP - H)).reshape(1, HP).astype(jnp.float32)
    b3 = jnp.pad(params["b3"], (0, OP - O)).reshape(1, OP).astype(jnp.float32)

    grid = (Bp // tile_b,)
    full = lambda a: pl.BlockSpec(a.shape, lambda i: (0,) * a.ndim)

    flops = 2 * Bp * (D * HP + HP * HP + HP * OP)
    bytes_accessed = (Bp * D * 2
                      + (D * HP + HP * HP + HP * OP) * 2
                      + (HP + HP + OP) * 4
                      + Bp * OP * 4)

    out = pl.pallas_call(
        fcm_kernel,
        out_shape=jax.ShapeDtypeStruct((Bp, OP), jnp.float32),
        grid_spec=pltpu.PrefetchScalarGridSpec(
            num_scalar_prefetch=0,
            grid=grid,
            in_specs=[
                pl.BlockSpec((tile_b, D), lambda i: (i, 0)),  # x batch tile
                full(w1), full(b1),
                full(w2), full(b2),
                full(w3), full(b3),
            ],
            out_specs=pl.BlockSpec((tile_b, OP), lambda i: (i, 0)),
        ),
        compiler_params=pltpu.CompilerParams(
            dimension_semantics=("parallel",),
        ),
        cost_estimate=pl.CostEstimate(
            flops=flops, transcendentals=0, bytes_accessed=bytes_accessed),
    )(xp, w1, b1, w2, b2, w3, b3)

    return out[:B, :O]


def init_params(key):
    """Deterministic init mimicking nn.Linear defaults (uniform +/- 1/sqrt(fan_in))."""
    ks = jax.random.split(key, 6)

    def linear(kw, kb, fan_in, fan_out):
        bound = 1.0 / jnp.sqrt(fan_in)
        w = jax.random.uniform(kw, (fan_in, fan_out), jnp.float32, -bound, bound)
        b = jax.random.uniform(kb, (fan_out,), jnp.float32, -bound, bound)
        return w, b

    w1, b1 = linear(ks[0], ks[1], 784, 200)
    w2, b2 = linear(ks[2], ks[3], 200, 200)
    w3, b3 = linear(ks[4], ks[5], 200, 10)
    return dict(w1=w1, b1=b1, w2=w2, b2=b2, w3=w3, b3=b3)


def fcm_reference(x, params):
    h = jnp.maximum(x @ params["w1"] + params["b1"], 0.0)
    h = jnp.maximum(h @ params["w2"] + params["b2"], 0.0)
    h = jnp.maximum(h @ params["w3"] + params["b3"], 0.0)
    return h


if __name__ == "__main__":
    key = jax.random.PRNGKey(0)
    kp, kx = jax.random.split(key)
    params = init_params(kp)

    # Small-batch check (single grid step).
    B = 8
    x = jax.random.normal(kx, (B, 784), dtype=jnp.float32)
    out = jax.block_until_ready(fcm_forward(x, params))
    ref = fcm_reference(x, params)
    assert out.shape == (B, 10)
    # bf16 operands (f32 accumulation) -> loosened tolerance vs f32 reference.
    assert jnp.allclose(out, ref, atol=5e-2, rtol=5e-2), "mismatch vs reference (B=8)"

    # Non-aligned, multi-tile check (exercises batch padding + 2-step grid).
    B2 = 300
    x2 = jax.random.normal(jax.random.PRNGKey(1), (B2, 784), dtype=jnp.float32)
    out2 = jax.block_until_ready(fcm_forward(x2, params))
    ref2 = fcm_reference(x2, params)
    assert out2.shape == (B2, 10)
    assert jnp.allclose(out2, ref2, atol=5e-2, rtol=5e-2), "mismatch vs reference (B=300)"

    print("KERNEL_OK")
</pallas_src>

<mosaic_0001>
module attributes {stable_mosaic.version = 11 : i64} {
  func.func @fcm_kernel(%arg0: i32, %arg1: memref<16x784xbf16, #tpu.memory_space<vmem>>, %arg2: memref<784x256xbf16, #tpu.memory_space<vmem>>, %arg3: memref<1x256xf32, #tpu.memory_space<vmem>>, %arg4: memref<256x256xbf16, #tpu.memory_space<vmem>>, %arg5: memref<1x256xf32, #tpu.memory_space<vmem>>, %arg6: memref<256x128xbf16, #tpu.memory_space<vmem>>, %arg7: memref<1x128xf32, #tpu.memory_space<vmem>>, %arg8: memref<16x128xf32, #tpu.memory_space<vmem>>) attributes {dimension_semantics = [#tpu.dimension_semantics<parallel>], iteration_bounds = array<i64: 1>, scalar_prefetch = 0 : i64, scratch_operands = 0 : i64, tpu.core_type = #tpu.core_type<tc>, window_params = [{transform_indices = @transform_0, window_bounds = array<i64: 16, 784>}, {pipeline_mode = #tpu.pipeline_mode<synchronous>, transform_indices = @transform_1, window_bounds = array<i64: 784, 256>}, {pipeline_mode = #tpu.pipeline_mode<synchronous>, transform_indices = @transform_2, window_bounds = array<i64: 1, 256>}, {pipeline_mode = #tpu.pipeline_mode<synchronous>, transform_indices = @transform_3, window_bounds = array<i64: 256, 256>}, {pipeline_mode = #tpu.pipeline_mode<synchronous>, transform_indices = @transform_4, window_bounds = array<i64: 1, 256>}, {pipeline_mode = #tpu.pipeline_mode<synchronous>, transform_indices = @transform_5, window_bounds = array<i64: 256, 128>}, {pipeline_mode = #tpu.pipeline_mode<synchronous>, transform_indices = @transform_6, window_bounds = array<i64: 1, 128>}, {transform_indices = @transform_7, window_bounds = array<i64: 16, 128>}]} {
    %c0 = arith.constant 0 : index
    %c0_0 = arith.constant 0 : index
    %0 = vector.load %arg1[%c0, %c0_0] : memref<16x784xbf16, #tpu.memory_space<vmem>>, vector<16x784xbf16>
    %c0_1 = arith.constant 0 : index
    %c0_2 = arith.constant 0 : index
    %1 = vector.load %arg2[%c0_1, %c0_2] : memref<784x256xbf16, #tpu.memory_space<vmem>>, vector<784x256xbf16>
    %cst = arith.constant dense<0.000000e+00> : vector<16x256xf32>
    %2 = tpu.matmul %0, %1, %cst {dimension_numbers = #tpu.dot_dimension_numbers<[1], [0], [0], [1], [0, 0, 1, 1], [], []>} : vector<16x784xbf16>, vector<784x256xbf16>, vector<16x256xf32> -> vector<16x256xf32>
    %c0_3 = arith.constant 0 : index
    %c0_4 = arith.constant 0 : index
    %3 = vector.load %arg3[%c0_3, %c0_4] : memref<1x256xf32, #tpu.memory_space<vmem>>, vector<1x256xf32>
    %4 = vector.broadcast %3 : vector<1x256xf32> to vector<16x256xf32>
    %5 = arith.addf %2, %4 : vector<16x256xf32>
    %cst_5 = arith.constant 0.000000e+00 : f32
    %6 = vector.broadcast %cst_5 : f32 to vector<16x256xf32>
    %7 = arith.maximumf %5, %6 : vector<16x256xf32>
    %8 = arith.truncf %7 : vector<16x256xf32> to vector<16x256xbf16>
    %c0_6 = arith.constant 0 : index
    %c0_7 = arith.constant 0 : index
    %9 = vector.load %arg4[%c0_6, %c0_7] : memref<256x256xbf16, #tpu.memory_space<vmem>>, vector<256x256xbf16>
    %cst_8 = arith.constant dense<0.000000e+00> : vector<16x256xf32>
    %10 = tpu.matmul %8, %9, %cst_8 {dimension_numbers = #tpu.dot_dimension_numbers<[1], [0], [0], [1], [0, 0, 1, 1], [], []>} : vector<16x256xbf16>, vector<256x256xbf16>, vector<16x256xf32> -> vector<16x256xf32>
    %c0_9 = arith.constant 0 : index
    %c0_10 = arith.constant 0 : index
    %11 = vector.load %arg5[%c0_9, %c0_10] : memref<1x256xf32, #tpu.memory_space<vmem>>, vector<1x256xf32>
    %12 = vector.broadcast %11 : vector<1x256xf32> to vector<16x256xf32>
    %13 = arith.addf %10, %12 : vector<16x256xf32>
    %cst_11 = arith.constant 0.000000e+00 : f32
    %14 = vector.broadcast %cst_11 : f32 to vector<16x256xf32>
    %15 = arith.maximumf %13, %14 : vector<16x256xf32>
    %16 = arith.truncf %15 : vector<16x256xf32> to vector<16x256xbf16>
    %c0_12 = arith.constant 0 : index
    %c0_13 = arith.constant 0 : index
    %17 = vector.load %arg6[%c0_12, %c0_13] : memref<256x128xbf16, #tpu.memory_space<vmem>>, vector<256x128xbf16>
    %cst_14 = arith.constant dense<0.000000e+00> : vector<16x128xf32>
    %18 = tpu.matmul %16, %17, %cst_14 {dimension_numbers = #tpu.dot_dimension_numbers<[1], [0], [0], [1], [0, 0, 1, 1], [], []>} : vector<16x256xbf16>, vector<256x128xbf16>, vector<16x128xf32> -> vector<16x128xf32>
    %c0_15 = arith.constant 0 : index
    %c0_16 = arith.constant 0 : index
    %19 = vector.load %arg7[%c0_15, %c0_16] : memref<1x128xf32, #tpu.memory_space<vmem>>, vector<1x128xf32>
    %20 = vector.broadcast %19 : vector<1x128xf32> to vector<16x128xf32>
    %21 = arith.addf %18, %20 : vector<16x128xf32>
    %cst_17 = arith.constant 0.000000e+00 : f32
    %22 = vector.broadcast %cst_17 : f32 to vector<16x128xf32>
    %23 = arith.maximumf %21, %22 : vector<16x128xf32>
    %c0_18 = arith.constant 0 : index
    %c0_19 = arith.constant 0 : index
    %24 = vector.load %arg8[%c0_18, %c0_19] : memref<16x128xf32, #tpu.memory_space<vmem>>, vector<16x128xf32>
    tpu.vector_store %arg8[%c0_18, %c0_19], %23 {strides = array<i32>} : memref<16x128xf32, #tpu.memory_space<vmem>>, vector<16x128xf32>,
    return
  }
  func.func @transform_0(%arg0: i32) -> (i32, i32) {
    %c0_i32 = arith.constant 0 : i32
    %c0_i32_0 = arith.constant 0 : i32
    return %arg0, %c0_i32 : i32, i32
  }
  func.func @transform_1(%arg0: i32) -> (i32, i32) {
    %c0_i32 = arith.constant 0 : i32
    %c0_i32_0 = arith.constant 0 : i32
    %c0_i32_1 = arith.constant 0 : i32
    return %c0_i32, %c0_i32_0 : i32, i32
  }
  func.func @transform_2(%arg0: i32) -> (i32, i32) {
    %c0_i32 = arith.constant 0 : i32
    %c0_i32_0 = arith.constant 0 : i32
    %c0_i32_1 = arith.constant 0 : i32
    return %c0_i32, %c0_i32_0 : i32, i32
  }
  func.func @transform_3(%arg0: i32) -> (i32, i32) {
    %c0_i32 = arith.constant 0 : i32
    %c0_i32_0 = arith.constant 0 : i32
    %c0_i32_1 = arith.constant 0 : i32
    return %c0_i32, %c0_i32_0 : i32, i32
  }
  func.func @transform_4(%arg0: i32) -> (i32, i32) {
    %c0_i32 = arith.constant 0 : i32
    %c0_i32_0 = arith.constant 0 : i32
    %c0_i32_1 = arith.constant 0 : i32
    return %c0_i32, %c0_i32_0 : i32, i32
  }
  func.func @transform_5(%arg0: i32) -> (i32, i32) {
    %c0_i32 = arith.constant 0 : i32
    %c0_i32_0 = arith.constant 0 : i32
    %c0_i32_1 = arith.constant 0 : i32
    return %c0_i32, %c0_i32_0 : i32, i32
  }
  func.func @transform_6(%arg0: i32) -> (i32, i32) {
    %c0_i32 = arith.constant 0 : i32
    %c0_i32_0 = arith.constant 0 : i32
    %c0_i32_1 = arith.constant 0 : i32
    return %c0_i32, %c0_i32_0 : i32, i32
  }
  func.func @transform_7(%arg0: i32) -> (i32, i32) {
    %c0_i32 = arith.constant 0 : i32
    %c0_i32_0 = arith.constant 0 : i32
    return %arg0, %c0_i32 : i32, i32
  }
}

</mosaic_0001>

<bundles_post_ra>
// kernel: tpu_custom_call.1
= control target key start
LH: loop header
LB: loop body
LE: loop exit
PB: predicated region body
PF: predicated region fallthrough
CT: control target
= control target key end

     0   :  { %12 = vsyncpa [#allocation3], 0  ;;  %s2443_s0 = inlined_call_operand.hbm [shape: bf16[16,784], index: 0, kind: input, shape index: {}]   ;;  %s2444_s1 = inlined_call_operand.hbm [shape: bf16[784,256], index: 1, kind: input, shape index: {}]   ;;  %s2445_s2 = inlined_call_operand.hbm [shape: f32[1,256], index: 2, kind: input, shape index: {}]   ;;  %s2446_s3 = inlined_call_operand.hbm [shape: bf16[256,256], index: 3, kind: input, shape index: {}]   ;;  %s2447_s4 = inlined_call_operand.vmem [shape: f32[1,256], index: 4, kind: input, shape index: {}]   ;;  %s2448_s5 = inlined_call_operand.hbm [shape: bf16[256,128], index: 5, kind: input, shape index: {}]   ;;  %s2449_s6 = inlined_call_operand.vmem [shape: f32[1,128], index: 6, kind: input, shape index: {}]   ;;  %s2450_s7 = inlined_call_operand.hbm [shape: f32[16,128], index: 7, kind: output, shape index: {}]  }
   0x1   :  { %13 = vsyncpa [#allocation6], 0 }
   0x2   :  { %14 = vsyncpa [#allocation9], 0  ;;  %s33_s26 = sshll.u32 %s2444_s1, 4  ;;  %s34_s26 = int_to_ptr.hbm [resolvable:$true] %s33_s26 }
   0x3   :  { %15 = vsyncpa [#allocation4], 0  ;;  %s2324_s27 = smov [#allocation5]   ;;  %s57_s8 = sshll.u32 %s2446_s3, 4  ;;  %s58_s8 = int_to_ptr.hbm [resolvable:$true] %s57_s8 }
   0x4   :  { %s35_s28 = sshll.u32 %s2324_s27, 4  ;;  %s2325_s9 = smov 128   ;;  %s36_s28 = int_to_ptr.vmem [resolvable:$true] %s35_s28 }
   0x5   :  { %s2326_s10 = smov 8   ;;  %s2327_s11 = smov [#allocation8]  }
   0x6   :  { %41 = dma.hbm_to_vmem [thread:$0]  %s34_s26, 12544, %s36_s28, [#allocation6], %s2325_s9, %s2325_s9, %s2326_s10  }
   0x7   :  { %s59_s12 = sshll.u32 %s2327_s11, 4  ;;  %s20_s14 = sshll.u32 %s2443_s0, 4  ;;  %s60_s12 = int_to_ptr.vmem [resolvable:$true] %s59_s12  ;;  %s21_s14 = int_to_ptr.hbm [resolvable:$true] %s20_s14 }
   0x8   :  { %65 = dma.hbm_to_vmem [thread:$0]  %s58_s8, 4096, %s60_s12, [#allocation9], %s2325_s9, %s2325_s9, %s2326_s10  }
   0x9   :  { %s2328_s3 = smov [#allocation2]   ;;  %s47_s18 = sshll.u32 %s2445_s2, 4  ;;  %s48_s18 = int_to_ptr.hbm [resolvable:$true] %s47_s18 }
   0xa   :  { %s22_s15 = sshll.u32 %s2328_s3, 4  ;;  %s2329_s19 = smov 448   ;;  %s23_s15 = int_to_ptr.vmem [resolvable:$true] %s22_s15 }
   0xb   :  { %s2330_s20 = smov 28   ;;  %s2331_s21 = smov [#allocation7]  }
   0xc   :  { %28 = dma.hbm_to_vmem [thread:$0]  %s21_s14, 896, %s23_s15, [#allocation3], %s2329_s19, %s2329_s19, %s2330_s20  }
   0xd   :  { %s49_s22 = sshll.u32 %s2331_s21, 4  ;;  %s72_s24 = sshll.u32 %s2448_s5, 4  ;;  %s50_s22 = int_to_ptr.vmem [resolvable:$true] %s49_s22  ;;  %s73_s24 = int_to_ptr.hbm [resolvable:$true] %s72_s24 }
   0xe   :  { %52 = dma.hbm_to_vmem [thread:$0]  %s48_s18, 32, %s50_s22, [#allocation6]  }
   0xf   :  { %s2332_s25 = smov [#allocation10]   ;;  %s2333_s27 = smov 64  }
  0x10   :  { %s74_s26 = sshll.u32 %s2332_s25, 4  ;;  %s2334_s28 = smov 4   ;;  %s75_s26 = int_to_ptr.vmem [resolvable:$true] %s74_s26 }
  0x11   :  { %80 = dma.hbm_to_vmem [thread:$0]  %s73_s24, 2048, %s75_s26, [#allocation9], %s2333_s27, %s2333_s27, %s2334_s28  }
  0x12   :  { %2316 = dma.done.wait [#allocation3], 896  }
  0x13   :  { %2317 = vsyncadd [#allocation3], 4294966400 }
  0x14   :  { %2318 = dma.done.wait [#allocation6], 12576  }
  0x15   :  { %2319 = vsyncadd [#allocation6], 4294954720 }
  0x16   :  { %2320 = dma.done.wait [#allocation9], 6144  }
  0x17   :  { %2321 = vsyncadd [#allocation9], 4294961152  ;;  %v1478_v0 = vld [vmem:[#allocation5 + $0x70] sm:$0xf]  ;;  %v2028_v1 = vld [vmem:[#allocation5 + $0x74] sm:$0xf0] }
  0x18   :  { %v1606_v2 = vld [vmem:[#allocation5 + $0x170] sm:$0xf]  ;;  %v1479_v3 = vor.u32 %v2028_v1, %v1478_v0  ;;  %v2060_v4 = vld [vmem:[#allocation5 + $0x174] sm:$0xf0]  ;;  %v1470_v11 = vld [vmem:[#allocation5 + $0x60] sm:$0xf] }
  0x19   :  { %v1670_v5 = vld [vmem:[#allocation5 + $0x1f0] sm:$0xf]  ;;  %v2076_v6 = vld [vmem:[#allocation5 + $0x1f4] sm:$0xf0]  ;;  %v1607_v7 = vor.u32 %v2060_v4, %v1606_v2  ;;  %v2026_v13 = vld [vmem:[#allocation5 + $0x64] sm:$0xf0] }
  0x1a   :  { %v1671_v8 = vor.u32 %v2076_v6, %v1670_v5  ;;  %v1542_v9 = vld [vmem:[#allocation5 + $0xf0] sm:$0xf]  ;;  %v2044_v10 = vld [vmem:[#allocation5 + $0xf4] sm:$0xf0]  ;;  %745 = vmatpush.bf16.msra.mxu0 %v1479_v3  ;;  %v1598_v14 = vld [vmem:[#allocation5 + $0x160] sm:$0xf]  ;;  %v1471_v16 = vor.u32 %v2026_v13, %v1470_v11 }
  0x1b   :  { %v1543_v12 = vor.u32 %v2044_v10, %v1542_v9  ;;  %v2058_v15 = vld [vmem:[#allocation5 + $0x164] sm:$0xf0]  ;;  %773 = vmatpush.bf16.msra.mxu2 %v1607_v7  ;;  %v1662_v18 = vld [vmem:[#allocation5 + $0x1e0] sm:$0xf]  ;;  %v1462_v23 = vld [vmem:[#allocation5 + $0x50] sm:$0xf] }
  0x1c   :  { %787 = vmatpush.bf16.msra.mxu3 %v1671_v8  ;;  %v1599_v17 = vor.u32 %v2058_v15, %v1598_v14  ;;  %v2074_v19 = vld [vmem:[#allocation5 + $0x1e4] sm:$0xf0]  ;;  %v1534_v20 = vld [vmem:[#allocation5 + $0xe0] sm:$0xf]  ;;  %v2024_v24 = vld [vmem:[#allocation5 + $0x54] sm:$0xf0] }
  0x1d   :  { %759 = vmatpush.bf16.msra.mxu1 %v1543_v12  ;;  %v1663_v21 = vor.u32 %v2074_v19, %v1662_v18  ;;  %v2042_v22 = vld [vmem:[#allocation5 + $0xe4] sm:$0xf0]  ;;  %v1590_v26 = vld [vmem:[#allocation5 + $0x150] sm:$0xf]  ;;  %v2056_v27 = vld [vmem:[#allocation5 + $0x154] sm:$0xf0]  ;;  %v1463_v29 = vor.u32 %v2024_v24, %v1462_v23 }
  0x1e   :  { %v1535_v25 = vor.u32 %v2042_v22, %v1534_v20  ;;  %v1654_v28 = vld [vmem:[#allocation5 + $0x1d0] sm:$0xf]  ;;  %746 = vmatpush.bf16.msra.mxu0 %v1471_v16  ;;  %v2072_v30 = vld [vmem:[#allocation5 + $0x1d4] sm:$0xf0]  ;;  %v1591_v33 = vor.u32 %v2056_v27, %v1590_v26  ;;  %v1454_v35 = vld [vmem:[#allocation5 + $0x40] sm:$0xf] }
  0x1f   :  { %v1526_v31 = vld [vmem:[#allocation5 + $0xd0] sm:$0xf]  ;;  %v2040_v32 = vld [vmem:[#allocation5 + $0xd4] sm:$0xf0]  ;;  %774 = vmatpush.bf16.msra.mxu2 %v1599_v17  ;;  %v1655_v34 = vor.u32 %v2072_v30, %v1654_v28  ;;  %v2022_v36 = vld [vmem:[#allocation5 + $0x44] sm:$0xf0] }
  0x20   :  { %788 = vmatpush.bf16.msra.mxu3 %v1663_v21  ;;  %v1582_v37 = vld [vmem:[#allocation5 + $0x140] sm:$0xf]  ;;  %v1527_v38 = vor.u32 %v2040_v32, %v1526_v31  ;;  %v2054_v39 = vld [vmem:[#allocation5 + $0x144] sm:$0xf0]  ;;  %v1455_v44 = vor.u32 %v2022_v36, %v1454_v35  ;;  %v1446_v47 = vld [vmem:[#allocation5 + $0x30] sm:$0xf] }
  0x21   :  { %760 = vmatpush.bf16.msra.mxu1 %v1535_v25  ;;  %v1646_v40 = vld [vmem:[#allocation5 + $0x1c0] sm:$0xf]  ;;  %v2070_v41 = vld [vmem:[#allocation5 + $0x1c4] sm:$0xf0]  ;;  %v1583_v45 = vor.u32 %v2054_v39, %v1582_v37  ;;  %v2020_v48 = vld [vmem:[#allocation5 + $0x34] sm:$0xf0] }
  0x22   :  { %v1518_v42 = vld [vmem:[#allocation5 + $0xc0] sm:$0xf]  ;;  %v2038_v43 = vld [vmem:[#allocation5 + $0xc4] sm:$0xf0]  ;;  %747 = vmatpush.bf16.msra.mxu0 %v1463_v29  ;;  %v1647_v46 = vor.u32 %v2070_v41, %v1646_v40  ;;  %v1574_v49 = vld [vmem:[#allocation5 + $0x130] sm:$0xf]  ;;  %v1447_v56 = vor.u32 %v2020_v48, %v1446_v47 }
  0x23   :  { %775 = vmatpush.bf16.msra.mxu2 %v1591_v33  ;;  %v1519_v50 = vor.u32 %v2038_v43, %v1518_v42  ;;  %v2052_v51 = vld [vmem:[#allocation5 + $0x134] sm:$0xf0]  ;;  %v1638_v52 = vld [vmem:[#allocation5 + $0x1b0] sm:$0xf]  ;;  %v1438_v59 = vld [vmem:[#allocation5 + $0x20] sm:$0xf] }
  0x24   :  { %789 = vmatpush.bf16.msra.mxu3 %v1655_v34  ;;  %v2068_v53 = vld [vmem:[#allocation5 + $0x1b4] sm:$0xf0]  ;;  %v1510_v54 = vld [vmem:[#allocation5 + $0xb0] sm:$0xf]  ;;  %v1575_v57 = vor.u32 %v2052_v51, %v1574_v49  ;;  %v2018_v60 = vld [vmem:[#allocation5 + $0x24] sm:$0xf0] }
  0x25   :  { %761 = vmatpush.bf16.msra.mxu1 %v1527_v38  ;;  %v2036_v55 = vld [vmem:[#allocation5 + $0xb4] sm:$0xf0]  ;;  %v1639_v58 = vor.u32 %v2068_v53, %v1638_v52  ;;  %v1566_v61 = vld [vmem:[#allocation5 + $0x120] sm:$0xf]  ;;  %v2050_v63 = vld [vmem:[#allocation5 + $0x124] sm:$0xf0]  ;;  %v1439_v4 = vor.u32 %v2018_v60, %v1438_v59 }
  0x26   :  { %748 = vmatpush.bf16.msra.mxu0 %v1455_v44  ;;  %v1511_v62 = vor.u32 %v2036_v55, %v1510_v54  ;;  %v1630_v0 = vld [vmem:[#allocation5 + $0x1a0] sm:$0xf]  ;;  %v2066_v1 = vld [vmem:[#allocation5 + $0x1a4] sm:$0xf0]  ;;  %v1430_v5 = vld [vmem:[#allocation5 + $0x10] sm:$0xf]  ;;  %v1567_v6 = vor.u32 %v2050_v63, %v1566_v61 }
  0x27   :  { %776 = vmatpush.bf16.msra.mxu2 %v1583_v45  ;;  %v1502_v2 = vld [vmem:[#allocation5 + $0xa0] sm:$0xf]  ;;  %v2034_v3 = vld [vmem:[#allocation5 + $0xa4] sm:$0xf0]  ;;  %v1631_v7 = vor.u32 %v2066_v1, %v1630_v0  ;;  %v2016_v8 = vld [vmem:[#allocation5 + $0x14] sm:$0xf0] }
  0x28   :  { %790 = vmatpush.bf16.msra.mxu3 %v1647_v46  ;;  %v1558_v9 = vld [vmem:[#allocation5 + $0x110] sm:$0xf]  ;;  %v2048_v10 = vld [vmem:[#allocation5 + $0x114] sm:$0xf0]  ;;  %v1503_v11 = vor.u32 %v2034_v3, %v1502_v2  ;;  %v1422_v16 = vld [vmem:[#allocation5] sm:$0xf]  ;;  %v1431_v18 = vor.u32 %v2016_v8, %v1430_v5 }
  0x29   :  { %762 = vmatpush.bf16.msra.mxu1 %v1519_v50  ;;  %v1622_v12 = vld [vmem:[#allocation5 + $0x190] sm:$0xf]  ;;  %v2064_v13 = vld [vmem:[#allocation5 + $0x194] sm:$0xf0]  ;;  %v2014_v17 = vld [vmem:[#allocation5 + $0x4] sm:$0xf0]  ;;  %v1559_v23 = vor.u32 %v2048_v10, %v1558_v9 }
  0x2a   :  { %749 = vmatpush.bf16.msra.mxu0 %v1447_v56  ;;  %v1494_v14 = vld [vmem:[#allocation5 + $0x90] sm:$0xf]  ;;  %v2032_v15 = vld [vmem:[#allocation5 + $0x94] sm:$0xf0]  ;;  %v1550_v19 = vld [vmem:[#allocation5 + $0x100] sm:$0xf]  ;;  %v1623_v24 = vor.u32 %v2064_v13, %v1622_v12  ;;  %v1423_v35 = vor.u32 %v2014_v17, %v1422_v16 }
  0x2b   :  { %777 = vmatpush.bf16.msra.mxu2 %v1575_v57  ;;  %v2046_v20 = vld [vmem:[#allocation5 + $0x104] sm:$0xf0]  ;;  %v1614_v21 = vld [vmem:[#allocation5 + $0x180] sm:$0xf]  ;;  %v1734_v25 = vld [vmem:[#allocation5 + $0x270] sm:$0xf]  ;;  %v1495_v28 = vor.u32 %v2032_v15, %v1494_v14 }
  0x2c   :  { %791 = vmatpush.bf16.msra.mxu3 %v1639_v58  ;;  %v2062_v22 = vld [vmem:[#allocation5 + $0x184] sm:$0xf0]  ;;  %v2092_v26 = vld [vmem:[#allocation5 + $0x274] sm:$0xf0]  ;;  %v2027_v27 = vld [vmem:[#allocation5 + $0x74] sm:$0xf]  ;;  %v1551_v39 = vor.u32 %v2046_v20, %v1550_v19 }
  0x2d   :  { %763 = vmatpush.bf16.msra.mxu1 %v1511_v62  ;;  %v1480_v29 = vld [vmem:[#allocation5 + $0x78] sm:$0xf0]  ;;  %v1486_v30 = vld [vmem:[#allocation5 + $0x80] sm:$0xf]  ;;  %v2030_v31 = vld [vmem:[#allocation5 + $0x84] sm:$0xf0]  ;;  %v1615_v40 = vor.u32 %v2062_v22, %v1614_v21  ;;  %v1735_v44 = vor.u32 %v2092_v26, %v1734_v25 }
  0x2e   :  { %750 = vmatpush.bf16.msra.mxu0 %v1439_v4  ;;  %v1402_v32 = vld [vmem:[#allocation2 + $0x8] sm:$0xf]  ;;  %v2010_v33 = vld [vmem:[#allocation2 + $0x20] sm:$0xf0]  ;;  %v2108_v36 = vld [vmem:[#allocation5 + $0x2f4] sm:$0xf0]  ;;  %v1483_v45 = vor.u32 %v2027_v27, %v1480_v29  ;;  %v1487_v49 = vor.u32 %v2030_v31, %v1486_v30 }
  0x2f   :  { %778 = vmatpush.bf16.msra.mxu2 %v1567_v6  ;;  %v1798_v34 = vld [vmem:[#allocation5 + $0x2f0] sm:$0xf]  ;;  %v1806_v37 = vld [vmem:[#allocation5 + $0x300] sm:$0xf]  ;;  %v2110_v38 = vld [vmem:[#allocation5 + $0x304] sm:$0xf0]  ;;  %v2397_v54 = vor.u32 %v2010_v33, %v1402_v32 }
  0x30   :  { %792 = vmatpush.bf16.msra.mxu3 %v1631_v7  ;;  %v2043_v41 = vld [vmem:[#allocation5 + $0xf4] sm:$0xf]  ;;  %v1544_v42 = vld [vmem:[#allocation5 + $0xf8] sm:$0xf0]  ;;  %v1394_v43 = vld [vmem:[#allocation2] sm:$0xf]  ;;  %v1807_v50 = vor.u32 %v2110_v38, %v1806_v37  ;;  %v1799_v55 = vor.u32 %v2108_v36, %v1798_v34 }
  0x31   :  { %764 = vmatpush.bf16.msra.mxu1 %v1503_v11  ;;  %v2009_v46 = vld [vmem:[#allocation2 + $0x18] sm:$0xf0]  ;;  %v2007_v47 = vld [vmem:[#allocation2 + $0xc] sm:$0xf]  ;;  %v1404_v48 = vld [vmem:[#allocation2 + $0x24] sm:$0xf0]  ;;  %v1547_v59 = vor.u32 %v2043_v41, %v1544_v42 }
  0x32   :  { %751 = vmatpush.bf16.msra.mxu0 %v1431_v18  ;;  %v1726_v51 = vld [vmem:[#allocation5 + $0x260] sm:$0xf]  ;;  %v2090_v52 = vld [vmem:[#allocation5 + $0x264] sm:$0xf0]  ;;  %v2025_v53 = vld [vmem:[#allocation5 + $0x64] sm:$0xf]  ;;  %v2399_v60 = vor.u32 %v2009_v46, %v1394_v43  ;;  %v2401_v63 = vor.u32 %v2007_v47, %v1404_v48 }
  0x33   :  { %779 = vmatpush.bf16.msra.mxu2 %v1559_v23  ;;  %v1472_v56 = vld [vmem:[#allocation5 + $0x68] sm:$0xf0]  ;;  %v1396_v58 = vld [vmem:[#allocation2 + $0x1c] sm:$0xf0]  ;;  %v1790_v61 = vld [vmem:[#allocation5 + $0x2e0] sm:$0xf]  ;;  %v1727_v0 = vor.u32 %v2090_v52, %v1726_v51 }
  0x34   :  { %793 = vmatpush.bf16.msra.mxu3 %v1623_v24  ;;  %v2006_v57 = vld [vmem:[#allocation2 + $0x4] sm:$0xf]  ;;  %v2106_v62 = vld [vmem:[#allocation5 + $0x2e4] sm:$0xf0]  ;;  %v2041_v1 = vld [vmem:[#allocation5 + $0xe4] sm:$0xf]  ;;  %v1475_v3 = vor.u32 %v2025_v53, %v1472_v56 }
  0x35   :  { %765 = vmatpush.bf16.msra.mxu1 %v1495_v28  ;;  %v1536_v2 = vld [vmem:[#allocation5 + $0xe8] sm:$0xf0]  ;;  %v2403_v4 = vor.u32 %v2006_v57, %v1396_v58  ;;  %v1718_v5 = vld [vmem:[#allocation5 + $0x250] sm:$0xf]  ;;  %v2088_v6 = vld [vmem:[#allocation5 + $0x254] sm:$0xf0]  ;;  %v1791_v7 = vor.u32 %v2106_v62, %v1790_v61 }
  0x36   :  { %752 = vmatpush.bf16.msra.mxu0 %v1423_v35  ;;  %v2023_v8 = vld [vmem:[#allocation5 + $0x54] sm:$0xf]  ;;  %v1464_v9 = vld [vmem:[#allocation5 + $0x58] sm:$0xf0]  ;;  %v1539_v10 = vor.u32 %v2041_v1, %v1536_v2  ;;  %v1782_v11 = vld [vmem:[#allocation5 + $0x2d0] sm:$0xf]  ;;  %v1719_v13 = vor.u32 %v2088_v6, %v1718_v5 }
  0x37   :  { %780 = vmatpush.bf16.msra.mxu2 %v1551_v39  ;;  %v2104_v12 = vld [vmem:[#allocation5 + $0x2d4] sm:$0xf0]  ;;  %v2039_v14 = vld [vmem:[#allocation5 + $0xd4] sm:$0xf]  ;;  %v1528_v15 = vld [vmem:[#allocation5 + $0xd8] sm:$0xf0]  ;;  %v1467_v16 = vor.u32 %v2023_v8, %v1464_v9 }
  0x38   :  { %794 = vmatpush.bf16.msra.mxu3 %v1615_v40  ;;  %v1710_v17 = vld [vmem:[#allocation5 + $0x240] sm:$0xf]  ;;  %v2086_v18 = vld [vmem:[#allocation5 + $0x244] sm:$0xf0]  ;;  %v1783_v19 = vor.u32 %v2104_v12, %v1782_v11  ;;  %v2021_v20 = vld [vmem:[#allocation5 + $0x44] sm:$0xf]  ;;  %v1531_v22 = vor.u32 %v2039_v14, %v1528_v15 }
  0x39   :  { %766 = vmatpush.bf16.msra.mxu1 %v1487_v49  ;;  %753 = vmatmul.bf16.vlgmr.msra.gmra.mxu0 %v2399_v60  ;;  %v1456_v21 = vld [vmem:[#allocation5 + $0x48] sm:$0xf0]  ;;  %v1774_v23 = vld [vmem:[#allocation5 + $0x2c0] sm:$0xf]  ;;  %v2102_v24 = vld [vmem:[#allocation5 + $0x2c4] sm:$0xf0]  ;;  %v1711_v25 = vor.u32 %v2086_v18, %v1710_v17 }
  0x3a   :  { %801 = vmatpush.bf16.msrb.mxu0 %v1735_v44  ;;  %781 = vmatmul.bf16.vlgmr.msra.gmra.mxu2 %v2397_v54  ;;  %v2037_v26 = vld [vmem:[#allocation5 + $0xc4] sm:$0xf]  ;;  %v1520_v27 = vld [vmem:[#allocation5 + $0xc8] sm:$0xf0]  ;;  %v1459_v28 = vor.u32 %v2021_v20, %v1456_v21  ;;  %v1702_v29 = vld [vmem:[#allocation5 + $0x230] sm:$0xf]  ;;  %v1775_v31 = vor.u32 %v2102_v24, %v1774_v23 }
  0x3b   :  { %836 = vmatpush.bf16.msrb.mxu2 %v1807_v50  ;;  %795 = vmatmul.bf16.vlgmr.msra.gmra.mxu3 %v2401_v63  ;;  %v2084_v30 = vld [vmem:[#allocation5 + $0x234] sm:$0xf0]  ;;  %v2019_v32 = vld [vmem:[#allocation5 + $0x34] sm:$0xf]  ;;  %v1448_v33 = vld [vmem:[#allocation5 + $0x38] sm:$0xf0]  ;;  %v1523_v35 = vor.u32 %v2037_v26, %v1520_v27 }
  0x3c   :  { %843 = vmatpush.bf16.msrb.mxu3 %v1483_v45  ;;  %767 = vmatmul.bf16.vlgmr.msra.gmra.mxu1 %v2403_v4  ;;  %v1766_v34 = vld [vmem:[#allocation5 + $0x2b0] sm:$0xf]  ;;  %v2100_v36 = vld [vmem:[#allocation5 + $0x2b4] sm:$0xf0]  ;;  %v1418_v37 = vld [vmem:[#allocation2 + $0x18] sm:$0xf]  ;;  %v1703_v39 = vor.u32 %v2084_v30, %v1702_v29  ;;  %v1451_v42 = vor.u32 %v2019_v32, %v1448_v33 }
  0x3d   :  { %815 = vmatpush.bf16.msrb.mxu1 %v1799_v55  ;;  %v2012_v38 = vld [vmem:[#allocation2 + $0x30] sm:$0xf0]  ;;  %v2035_v40 = vld [vmem:[#allocation5 + $0xb4] sm:$0xf]  ;;  %v1694_v43 = vld [vmem:[#allocation5 + $0x220] sm:$0xf]  ;;  %v1767_v45 = vor.u32 %v2100_v36, %v1766_v34 }
  0x3e   :  { %802 = vmatpush.bf16.msrb.mxu0 %v1727_v0  ;;  %v1512_v41 = vld [vmem:[#allocation5 + $0xb8] sm:$0xf0]  ;;  %v2082_v44 = vld [vmem:[#allocation5 + $0x224] sm:$0xf0]  ;;  %v2017_v46 = vld [vmem:[#allocation5 + $0x24] sm:$0xf]  ;;  %v2409_v48 = vor.u32 %v2012_v38, %v1418_v37 }
  0x3f   :  { %857 = vmatpush.bf16.msra.mxu2 %v1547_v59  ;;  %v1440_v47 = vld [vmem:[#allocation5 + $0x28] sm:$0xf0]  ;;  %v1515_v49 = vor.u32 %v2035_v40, %v1512_v41  ;;  %v1758_v50 = vld [vmem:[#allocation5 + $0x2a0] sm:$0xf]  ;;  %v2098_v51 = vld [vmem:[#allocation5 + $0x2a4] sm:$0xf0]  ;;  %v1695_v52 = vor.u32 %v2082_v44, %v1694_v43 }
  0x40   :  { %844 = vmatpush.bf16.msrb.mxu3 %v1475_v3  ;;  %vm741_vm0 = vcmask 130048   ;;  %v2033_v53 = vld [vmem:[#allocation5 + $0xa4] sm:$0xf]  ;;  %v1504_v55 = vld [vmem:[#allocation5 + $0xa8] sm:$0xf0]  ;;  %v1443_v56 = vor.u32 %v2017_v46, %v1440_v47  ;;  %v1759_v61 = vor.u32 %v2098_v51, %v1758_v50  ;;  %s2335_s30 = smov [#allocation11]  }
  0x41   :  { %816 = vmatpush.bf16.msrb.mxu1 %v1791_v7  ;;  %v1686_v57 = vld [vmem:[#allocation5 + $0x210] sm:$0xf]  ;;  %v2080_v58 = vld [vmem:[#allocation5 + $0x214] sm:$0xf0]  ;;  %v2015_v59 = vld [vmem:[#allocation5 + $0x14] sm:$0xf]  ;;  %v1507_v2 = vor.u32 %v2033_v53, %v1504_v55 }
  0x42   :  { %803 = vmatpush.bf16.msrb.mxu0 %v1719_v13  ;;  %v1432_v62 = vld [vmem:[#allocation5 + $0x18] sm:$0xf0]  ;;  %v1750_v0 = vld [vmem:[#allocation5 + $0x290] sm:$0xf]  ;;  %v2096_v1 = vld [vmem:[#allocation5 + $0x294] sm:$0xf0]  ;;  %v1687_v7 = vor.u32 %v2080_v58, %v1686_v57 }
  0x43   :  { %858 = vmatpush.bf16.msra.mxu2 %v1539_v10  ;;  %v2031_v3 = vld [vmem:[#allocation5 + $0x94] sm:$0xf]  ;;  %v1496_v5 = vld [vmem:[#allocation5 + $0x98] sm:$0xf0]  ;;  %v1678_v6 = vld [vmem:[#allocation5 + $0x200] sm:$0xf]  ;;  %v1435_v11 = vor.u32 %v2015_v59, %v1432_v62  ;;  %v1751_v15 = vor.u32 %v2096_v1, %v1750_v0 }
  0x44   :  { %845 = vmatpush.bf16.msrb.mxu3 %v1467_v16  ;;  %v2078_v8 = vld [vmem:[#allocation5 + $0x204] sm:$0xf0]  ;;  %v2013_v9 = vld [vmem:[#allocation5 + $0x4] sm:$0xf]  ;;  %v1424_v10 = vld [vmem:[#allocation5 + $0x8] sm:$0xf0] }
  0x45   :  { %817 = vmatpush.bf16.msrb.mxu1 %v1783_v19  ;;  %v2059_v12 = vld [vmem:[#allocation5 + $0x174] sm:$0xf]  ;;  %v1608_v13 = vld [vmem:[#allocation5 + $0x178] sm:$0xf0]  ;;  %v1742_v17 = vld [vmem:[#allocation5 + $0x280] sm:$0xf]  ;;  %v1499_v19 = vor.u32 %v2031_v3, %v1496_v5  ;;  %v1679_v23 = vor.u32 %v2078_v8, %v1678_v6  ;;  %v1427_v27 = vor.u32 %v2013_v9, %v1424_v10 }
  0x46   :  { %804 = vmatpush.bf16.msrb.mxu0 %v1711_v25  ;;  %v2091_v14 = vld [vmem:[#allocation5 + $0x274] sm:$0xf]  ;;  %v1736_v16 = vld [vmem:[#allocation5 + $0x278] sm:$0xf0]  ;;  %v2094_v18 = vld [vmem:[#allocation5 + $0x284] sm:$0xf0] }
  0x47   :  { %859 = vmatpush.bf16.msra.mxu2 %v1531_v22  ;;  %v1410_v20 = vld [vmem:[#allocation2 + $0x10] sm:$0xf]  ;;  %v2011_v21 = vld [vmem:[#allocation2 + $0x28] sm:$0xf0]  ;;  %v2029_v22 = vld [vmem:[#allocation5 + $0x84] sm:$0xf]  ;;  %v1739_v32 = vor.u32 %v2091_v14, %v1736_v16  ;;  %v1743_v33 = vor.u32 %v2094_v18, %v1742_v17 }
  0x48   :  { %846 = vmatpush.bf16.msrb.mxu3 %v1459_v28  ;;  %v1488_v24 = vld [vmem:[#allocation5 + $0x88] sm:$0xf0]  ;;  %v2075_v25 = vld [vmem:[#allocation5 + $0x1f4] sm:$0xf]  ;;  %v1672_v26 = vld [vmem:[#allocation5 + $0x1f8] sm:$0xf0]  ;;  %v1611_v28 = vor.u32 %v2059_v12, %v1608_v13  ;;  %v2413_v37 = vor.u32 %v2011_v21, %v1410_v20 }
  0x49   :  { %818 = vmatpush.bf16.msrb.mxu1 %v1775_v31  ;;  %v2107_v29 = vld [vmem:[#allocation5 + $0x2f4] sm:$0xf]  ;;  %v1800_v30 = vld [vmem:[#allocation5 + $0x2f8] sm:$0xf0]  ;;  %v1412_v34 = vld [vmem:[#allocation2 + $0x2c] sm:$0xf0]  ;;  %v1491_v38 = vor.u32 %v2029_v22, %v1488_v24  ;;  %v1675_v41 = vor.u32 %v2075_v25, %v1672_v26 }
  0x4a   :  { %805 = vmatpush.bf16.msrb.mxu0 %v1703_v39  ;;  %1812 = vmatmul.msk.bf16.vlgmr.msrb.gmra.mxu2 %vm741_vm0, %v2409_v48  ;;  %v2008_v31 = vld [vmem:[#allocation2 + $0x14] sm:$0xf]  ;;  %v1600_v36 = vld [vmem:[#allocation5 + $0x168] sm:$0xf0]  ;;  %v2089_v39 = vld [vmem:[#allocation5 + $0x264] sm:$0xf] }
  0x4b   :  { %860 = vmatpush.bf16.msra.mxu2 %v1523_v35  ;;  %v2057_v35 = vld [vmem:[#allocation5 + $0x164] sm:$0xf]  ;;  %v1728_v40 = vld [vmem:[#allocation5 + $0x268] sm:$0xf0]  ;;  %v2415_v44 = vor.u32 %v2008_v31, %v1412_v34  ;;  %v2055_v51 = vld [vmem:[#allocation5 + $0x154] sm:$0xf] }
  0x4c   :  { %847 = vmatpush.bf16.msrb.mxu3 %v1451_v42  ;;  %v1803_v42 = vor.u32 %v2107_v29, %v1800_v30  ;;  %v2073_v43 = vld [vmem:[#allocation5 + $0x1e4] sm:$0xf]  ;;  %v1664_v46 = vld [vmem:[#allocation5 + $0x1e8] sm:$0xf0]  ;;  %v1731_v50 = vor.u32 %v2089_v39, %v1728_v40  ;;  %v2087_v53 = vld [vmem:[#allocation5 + $0x254] sm:$0xf] }
  0x4d   :  { %819 = vmatpush.bf16.msrb.mxu1 %v1767_v45  ;;  %v1603_v45 = vor.u32 %v2057_v35, %v1600_v36  ;;  %v2105_v47 = vld [vmem:[#allocation5 + $0x2e4] sm:$0xf]  ;;  %v1720_v55 = vld [vmem:[#allocation5 + $0x258] sm:$0xf0]  ;;  %v2071_v58 = vld [vmem:[#allocation5 + $0x1d4] sm:$0xf] }
  0x4e   :  { %806 = vmatpush.bf16.msrb.mxu0 %v1695_v52  ;;  %v1592_v52 = vld [vmem:[#allocation5 + $0x158] sm:$0xf0]  ;;  %v2103_v62 = vld [vmem:[#allocation5 + $0x2d4] sm:$0xf]  ;;  %v1723_v1 = vor.u32 %v2087_v53, %v1720_v55  ;;  %v1584_v3 = vld [vmem:[#allocation5 + $0x148] sm:$0xf0] }
  0x4f   :  { %861 = vmatpush.bf16.msra.mxu2 %v1515_v49  ;;  %v1792_v49 = vld [vmem:[#allocation5 + $0x2e8] sm:$0xf0]  ;;  %v1595_v59 = vor.u32 %v2055_v51, %v1592_v52  ;;  %v1784_v0 = vld [vmem:[#allocation5 + $0x2d8] sm:$0xf0]  ;;  %v2085_v5 = vld [vmem:[#allocation5 + $0x244] sm:$0xf] }
  0x50   :  { %848 = vmatpush.bf16.msrb.mxu3 %v1443_v56  ;;  %v1667_v56 = vor.u32 %v2073_v43, %v1664_v46  ;;  %v1795_v57 = vor.u32 %v2105_v47, %v1792_v49  ;;  %v1712_v6 = vld [vmem:[#allocation5 + $0x248] sm:$0xf0]  ;;  %v1787_v8 = vor.u32 %v2103_v62, %v1784_v0  ;;  %v2069_v9 = vld [vmem:[#allocation5 + $0x1c4] sm:$0xf]  ;;  %v1576_v16 = vld [vmem:[#allocation5 + $0x138] sm:$0xf0] }
  0x51   :  { %820 = vmatpush.bf16.msrb.mxu1 %v1759_v61  ;;  %v1656_v61 = vld [vmem:[#allocation5 + $0x1d8] sm:$0xf0]  ;;  %v1648_v10 = vld [vmem:[#allocation5 + $0x1c8] sm:$0xf0]  ;;  %v2101_v12 = vld [vmem:[#allocation5 + $0x2c4] sm:$0xf]  ;;  %v1715_v14 = vor.u32 %v2085_v5, %v1712_v6 }
  0x52   :  { %807 = vmatpush.bf16.msrb.mxu0 %v1687_v7  ;;  %v1659_v7 = vor.u32 %v2071_v58, %v1656_v61  ;;  %v1776_v13 = vld [vmem:[#allocation5 + $0x2c8] sm:$0xf0]  ;;  %v2083_v17 = vld [vmem:[#allocation5 + $0x234] sm:$0xf]  ;;  %v1651_v18 = vor.u32 %v2069_v9, %v1648_v10  ;;  %v1640_v21 = vld [vmem:[#allocation5 + $0x1b8] sm:$0xf0] }
  0x53   :  { %862 = vmatpush.bf16.msra.mxu2 %v1507_v2  ;;  %v2053_v2 = vld [vmem:[#allocation5 + $0x144] sm:$0xf]  ;;  %v2099_v22 = vld [vmem:[#allocation5 + $0x2b4] sm:$0xf]  ;;  %v1568_v26 = vld [vmem:[#allocation5 + $0x128] sm:$0xf0] }
  0x54   :  { %849 = vmatpush.bf16.msrb.mxu3 %v1435_v11  ;;  %v1587_v11 = vor.u32 %v2053_v2, %v1584_v3  ;;  %v2049_v25 = vld [vmem:[#allocation5 + $0x124] sm:$0xf]  ;;  %v1760_v35 = vld [vmem:[#allocation5 + $0x2a8] sm:$0xf0]  ;;  %v1560_v39 = vld [vmem:[#allocation5 + $0x118] sm:$0xf0] }
  0x55   :  { %821 = vmatpush.bf16.msrb.mxu1 %v1751_v15  ;;  %v2051_v15 = vld [vmem:[#allocation5 + $0x134] sm:$0xf]  ;;  %v2065_v31 = vld [vmem:[#allocation5 + $0x1a4] sm:$0xf]  ;;  %v1624_v47 = vld [vmem:[#allocation5 + $0x198] sm:$0xf0] }
  0x56   :  { %808 = vmatpush.bf16.msrb.mxu0 %v1679_v23  ;;  %v1579_v20 = vor.u32 %v2051_v15, %v1576_v16  ;;  %v1768_v23 = vld [vmem:[#allocation5 + $0x2b8] sm:$0xf0]  ;;  %v2097_v34 = vld [vmem:[#allocation5 + $0x2a4] sm:$0xf]  ;;  %v2079_v40 = vld [vmem:[#allocation5 + $0x214] sm:$0xf] }
  0x57   :  { %863 = vmatpush.bf16.msra.mxu2 %v1499_v19  ;;  %v2067_v19 = vld [vmem:[#allocation5 + $0x1b4] sm:$0xf]  ;;  %v1771_v30 = vor.u32 %v2099_v22, %v1768_v23  ;;  %v1763_v43 = vor.u32 %v2097_v34, %v1760_v35  ;;  %v2045_v52 = vld [vmem:[#allocation5 + $0x104] sm:$0xf]  ;;  %v1552_v53 = vld [vmem:[#allocation5 + $0x108] sm:$0xf0] }
  0x58   :  { %850 = vmatpush.bf16.msrb.mxu3 %v1427_v27  ;;  %v2081_v27 = vld [vmem:[#allocation5 + $0x224] sm:$0xf]  ;;  %v1643_v29 = vor.u32 %v2067_v19, %v1640_v21  ;;  %v2095_v49 = vld [vmem:[#allocation5 + $0x294] sm:$0xf]  ;;  %v1808_v58 = vld [vmem:[#allocation5 + $0x308] sm:$0xf0]  ;;  %v1555_v62 = vor.u32 %v2045_v52, %v1552_v53 }
  0x59   :  { %822 = vmatpush.bf16.msrb.mxu1 %v1743_v33  ;;  %809 = vmatmul.bf16.vlgmr.msrb.gmra.mxu0 %v2413_v37  ;;  %v1632_v33 = vld [vmem:[#allocation5 + $0x1a8] sm:$0xf0]  ;;  %v2077_v55 = vld [vmem:[#allocation5 + $0x204] sm:$0xf]  ;;  %v1864_v15 = vld [vmem:[#allocation8 + $0x60] sm:$0xf] }
  0x5a   :  { %871 = vmatpush.bf16.msra.mxu0 %v1611_v28  ;;  %v1696_v28 = vld [vmem:[#allocation5 + $0x228] sm:$0xf0]  ;;  %v2061_v0 = vld [vmem:[#allocation5 + $0x184] sm:$0xf]  ;;  %v2124_v16 = vld [vmem:[#allocation8 + $0x64] sm:$0xf0] }
  0x5b   :  { %864 = vmatpush.bf16.msra.mxu2 %v1491_v38  ;;  %851 = vmatmul.bf16.vlgmr.msrb.gmra.mxu3 %v2399_v60  ;;  %v1779_v60 = vor.u32 %v2101_v12, %v1776_v13  ;;  %v1699_v36 = vor.u32 %v2081_v27, %v1696_v28  ;;  %v2047_v38 = vld [vmem:[#allocation5 + $0x114] sm:$0xf]  ;;  %v2093_v3 = vld [vmem:[#allocation5 + $0x284] sm:$0xf]  ;;  %v1744_v5 = vld [vmem:[#allocation5 + $0x288] sm:$0xf0] }
  0x5c   :  { %899 = vmatpush.bf16.msra.mxu3 %v1739_v32  ;;  %823 = vmatmul.bf16.vlgmr.msrb.gmra.mxu1 %v2415_v44  ;;  %v1571_v32 = vor.u32 %v2049_v25, %v1568_v26  ;;  %v1563_v46 = vor.u32 %v2047_v38, %v1560_v39  ;;  %v1872_v9 = vld [vmem:[#allocation8 + $0x70] sm:$0xf]  ;;  %v2126_v10 = vld [vmem:[#allocation8 + $0x74] sm:$0xf0]  ;;  %v1874_v13 = vld [vmem:[#allocation8 + $0x78] sm:$0xf0] }
  0x5d   :  { %885 = vmatpush.bf16.msra.mxu1 %v1675_v41  ;;  %v1688_v41 = vld [vmem:[#allocation5 + $0x218] sm:$0xf0]  ;;  %v1873_v12 = vor.u32 %v2126_v10, %v1872_v9  ;;  %v2119_v22 = vld [vmem:[#allocation8 + $0x44] sm:$0xf]  ;;  %v1840_v26 = vld [vmem:[#allocation8 + $0x30] sm:$0xf] }
  0x5e   :  { %872 = vmatpush.bf16.msra.mxu0 %v1603_v45  ;;  %865 = vmatmul.bf16.vlgmr.msra.gmra.mxu2 %v2403_v4  ;;  %v1704_v4 = vld [vmem:[#allocation5 + $0x238] sm:$0xf0]  ;;  %v2063_v45 = vld [vmem:[#allocation5 + $0x194] sm:$0xf]  ;;  %v1691_v51 = vor.u32 %v2079_v40, %v1688_v41  ;;  %v2118_v27 = vld [vmem:[#allocation8 + $0x34] sm:$0xf0] }
  0x5f   :  { %913 = vmatpush.bf16.msrb.mxu2 %v1803_v42  ;;  %v1707_v24 = vor.u32 %v2083_v17, %v1704_v4  ;;  %v1635_v42 = vor.u32 %v2065_v31, %v1632_v33  ;;  %v2123_v17 = vld [vmem:[#allocation8 + $0x64] sm:$0xf]  ;;  %v2120_v21 = vld [vmem:[#allocation8 + $0x44] sm:$0xf0]  ;;  %v2117_v28 = vld [vmem:[#allocation8 + $0x34] sm:$0xf] }
  0x60   :  { %900 = vmatpush.bf16.msra.mxu3 %v1731_v50  ;;  %v1752_v50 = vld [vmem:[#allocation5 + $0x298] sm:$0xf0]  ;;  %v2115_v34 = vld [vmem:[#allocation8 + $0x24] sm:$0xf]  ;;  %v1824_v39 = vld [vmem:[#allocation8 + $0x10] sm:$0xf] }
  0x61   :  { %886 = vmatpush.bf16.msra.mxu1 %v1667_v56  ;;  %v1680_v56 = vld [vmem:[#allocation5 + $0x208] sm:$0xf0]  ;;  %v1755_v61 = vor.u32 %v2095_v49, %v1752_v50  ;;  %v2116_v33 = vld [vmem:[#allocation8 + $0x24] sm:$0xf0]  ;;  %v2113_v41 = vld [vmem:[#allocation8 + $0x14] sm:$0xf] }
  0x62   :  { %873 = vmatpush.bf16.msra.mxu0 %v1595_v59  ;;  %v1627_v59 = vor.u32 %v2063_v45, %v1624_v47  ;;  %v1683_v2 = vor.u32 %v2077_v55, %v1680_v56  ;;  %v2114_v40 = vld [vmem:[#allocation8 + $0x14] sm:$0xf0]  ;;  %v1816_v50 = vld [vmem:[#allocation8] sm:$0xf]  ;;  %v2111_v52 = vld [vmem:[#allocation8 + $0x4] sm:$0xf] }
  0x63   :  { %914 = vmatpush.bf16.msrb.mxu2 %v1795_v57  ;;  %v2109_v57 = vld [vmem:[#allocation5 + $0x304] sm:$0xf]  ;;  %v1818_v55 = vld [vmem:[#allocation8 + $0x8] sm:$0xf0]  ;;  %v1938_v9 = vld [vmem:[#allocation8 + $0xf8] sm:$0xf0] }
  0x64   :  { %901 = vmatpush.bf16.msra.mxu3 %v1723_v1  ;;  %v1616_v1 = vld [vmem:[#allocation5 + $0x188] sm:$0xf0]  ;;  %v1811_v6 = vor.u32 %v2109_v57, %v1808_v58  ;;  %v1821_v57 = vor.u32 %v2111_v52, %v1818_v55  ;;  %v1896_v52 = vld [vmem:[#allocation8 + $0xa0] sm:$0xf]  ;;  %s1375_s8 = sshll.u32 %s2335_s30, 4  ;;  %s1377_s13 = sshll.u32 %s2450_s7, 4  ;;  %s1376_s8 = int_to_ptr.vmem [resolvable:$true] %s1375_s8  ;;  %s1378_s13 = int_to_ptr.hbm [resolvable:$true] %s1377_s13 }
  0x65   :  { %887 = vmatpush.bf16.msra.mxu1 %v1659_v7  ;;  %v1619_v7 = vor.u32 %v2061_v0, %v1616_v1 }
  0x66   :  { %874 = vmatpush.bf16.msra.mxu0 %v1587_v11  ;;  %v2125_v11 = vld [vmem:[#allocation8 + $0x74] sm:$0xf] }
  0x67   :  { %915 = vmatpush.bf16.msrb.mxu2 %v1787_v8  ;;  %v1747_v8 = vor.u32 %v2093_v3, %v1744_v5  ;;  %v1936_v5 = vld [vmem:[#allocation8 + $0xf0] sm:$0xf] }
  0x68   :  { %902 = vmatpush.bf16.msra.mxu3 %v1715_v14  ;;  %v1877_v14 = vor.u32 %v2125_v11, %v1874_v13  ;;  %v1928_v13 = vld [vmem:[#allocation8 + $0xe0] sm:$0xf] }
  0x69   :  { %888 = vmatpush.bf16.msra.mxu1 %v1651_v18  ;;  %v2122_v18 = vld [vmem:[#allocation8 + $0x54] sm:$0xf0] }
  0x6a   :  { %875 = vmatpush.bf16.msra.mxu0 %v1579_v20  ;;  %v1848_v20 = vld [vmem:[#allocation8 + $0x40] sm:$0xf] }
  0x6b   :  { %916 = vmatpush.bf16.msrb.mxu2 %v1779_v60  ;;  %v1858_v60 = vld [vmem:[#allocation8 + $0x58] sm:$0xf0]  ;;  %v1849_v23 = vor.u32 %v2120_v21, %v1848_v20  ;;  %v2137_v20 = vld [vmem:[#allocation8 + $0xd4] sm:$0xf] }
  0x6c   :  { %903 = vmatpush.bf16.msra.mxu3 %v1707_v24  ;;  %v1850_v24 = vld [vmem:[#allocation8 + $0x48] sm:$0xf0] }
  0x6d   :  { %889 = vmatpush.bf16.msra.mxu1 %v1643_v29  ;;  %v1853_v25 = vor.u32 %v2119_v22, %v1850_v24  ;;  %v1841_v29 = vor.u32 %v2118_v27, %v1840_v26  ;;  %v1912_v27 = vld [vmem:[#allocation8 + $0xc0] sm:$0xf] }
  0x6e   :  { %876 = vmatpush.bf16.msra.mxu0 %v1571_v32  ;;  %v1832_v32 = vld [vmem:[#allocation8 + $0x20] sm:$0xf] }
  0x6f   :  { %917 = vmatpush.bf16.msrb.mxu2 %v1771_v30  ;;  %v1842_v30 = vld [vmem:[#allocation8 + $0x38] sm:$0xf0]  ;;  %v1833_v35 = vor.u32 %v2116_v33, %v1832_v32  ;;  %v1914_v32 = vld [vmem:[#allocation8 + $0xc8] sm:$0xf0] }
  0x70   :  { %904 = vmatpush.bf16.msra.mxu3 %v1699_v36  ;;  %v1845_v31 = vor.u32 %v2117_v28, %v1842_v30  ;;  %v1834_v36 = vld [vmem:[#allocation8 + $0x28] sm:$0xf0]  ;;  %v2136_v28 = vld [vmem:[#allocation8 + $0xc4] sm:$0xf0] }
  0x71   :  { %890 = vmatpush.bf16.msra.mxu1 %v1635_v42  ;;  %v1837_v38 = vor.u32 %v2115_v34, %v1834_v36  ;;  %v1825_v42 = vor.u32 %v2114_v40, %v1824_v39  ;;  %v1913_v30 = vor.u32 %v2136_v28, %v1912_v27  ;;  %v1904_v40 = vld [vmem:[#allocation8 + $0xb0] sm:$0xf] }
  0x72   :  { %877 = vmatpush.bf16.msra.mxu0 %v1563_v46  ;;  %v2427_v46 = vld [vmem:[#allocation7] sm:$0x3] }
  0x73   :  { %918 = vmatpush.bf16.msrb.mxu2 %v1763_v43  ;;  %v1826_v43 = vld [vmem:[#allocation8 + $0x18] sm:$0xf0]  ;;  %v212_v58 = vperm.slane %v2427_v46, 0 }
  0x74   :  { %905 = vmatpush.bf16.msra.mxu3 %v1691_v51  ;;  %v1829_v45 = vor.u32 %v2113_v41, %v1826_v43  ;;  %v2112_v51 = vld [vmem:[#allocation8 + $0x4] sm:$0xf0]  ;;  %v2134_v41 = vld [vmem:[#allocation8 + $0xb4] sm:$0xf0] }
  0x75   :  { %891 = vmatpush.bf16.msra.mxu1 %v1627_v59  ;;  %v1817_v53 = vor.u32 %v2112_v51, %v1816_v50  ;;  %v1905_v43 = vor.u32 %v2134_v41, %v1904_v40  ;;  %v2148_v40 = vld [vmem:[#allocation10 + $0x28] sm:$0xff] }
  0x76   :  { %878 = vmatpush.bf16.msra.mxu0 %v1555_v62  ;;  %v2156_v41 = vld [vmem:[#allocation10 + $0x68] sm:$0xff] }
  0x77   :  { %919 = vmatpush.bf16.msrb.mxu2 %v1755_v61 }
  0x78   :  { %906 = vmatpush.bf16.msra.mxu3 %v1683_v2 }
  0x79   :  { %892 = vmatpush.bf16.msra.mxu1 %v1619_v7  ;;  %879 = vmatmul.bf16.vlgmr.msra.gmra.mxu0 %v2397_v54  ;;  %v1865_v54 = vor.u32 %v2124_v16, %v1864_v15  ;;  %v2141_v7 = vld [vmem:[#allocation8 + $0xf4] sm:$0xf]  ;;  %v2139_v15 = vld [vmem:[#allocation8 + $0xe4] sm:$0xf] }
  0x7a   :  { %934 = vmatpush.bf16.msrb.mxu0 %v1811_v6  ;;  %v2142_v6 = vld [vmem:[#allocation8 + $0xf4] sm:$0xf0]  ;;  %v1941_v11 = vor.u32 %v2141_v7, %v1938_v9  ;;  %v1880_v7 = vld [vmem:[#allocation8 + $0x80] sm:$0xf]  ;;  %v2127_v9 = vld [vmem:[#allocation8 + $0x84] sm:$0xf] }
  0x7b   :  { %907 = vmatmul.bf16.vlgmr.msra.gmra.mxu3 %v2413_v37  ;;  %920 = vmatpush.bf16.msrb.mxu2 %v1747_v8  ;;  %v1866_v37 = vld [vmem:[#allocation8 + $0x68] sm:$0xf0]  ;;  %v1937_v8 = vor.u32 %v2142_v6, %v1936_v5 }
  0x7c   :  { %893 = vmatmul.bf16.vlgmr.msra.gmra.mxu1 %v2401_v63  ;;  %v1869_v4 = vor.u32 %v2123_v17, %v1866_v37  ;;  %v1856_v63 = vld [vmem:[#allocation8 + $0x50] sm:$0xf]  ;;  %v1930_v37 = vld [vmem:[#allocation8 + $0xe8] sm:$0xf0] }
  0x7d   :  { %1145 = vmatpush.bf16.msrb.mxu1 %v1873_v12  ;;  %1159 = vmatpush.bf16.msrb.mxu3 %v1937_v8  ;;  %v2128_v8 = vld [vmem:[#allocation8 + $0x84] sm:$0xf0] }
  0x7e   :  { %921 = vmatmul.bf16.vlgmr.msrb.gmra.mxu2 %v2415_v44  ;;  %1173 = vmatpush.bf16.msra.mxu0 %v1877_v14  ;;  %v2121_v44 = vld [vmem:[#allocation8 + $0x54] sm:$0xf]  ;;  %v2140_v14 = vld [vmem:[#allocation8 + $0xe4] sm:$0xf0] }
  0x7f   :  { %v1861_v19 = vor.u32 %v2121_v44, %v1858_v60  ;;  %1187 = vmatpush.bf16.msra.mxu2 %v1941_v11  ;;  %v1882_v11 = vld [vmem:[#allocation8 + $0x88] sm:$0xf0] }
  0x81   :  { %1146 = vmatpush.bf16.msrb.mxu1 %v1865_v54  ;;  %v1929_v54 = vor.u32 %v2140_v14, %v1928_v13  ;;  %v213_v13 = vperm.slane %v2427_v46, 1 }
  0x82   :  { %1174 = vmatpush.bf16.msra.mxu0 %v1869_v4 }
  0x83   :  { %1160 = vmatpush.bf16.msrb.mxu3 %v1929_v54 }
  0x86   :  { %1175 = vmatpush.bf16.msra.mxu0 %v1861_v19  ;;  %v2138_v19 = vld [vmem:[#allocation8 + $0xd4] sm:$0xf0] }
  0x89   :  { %1813 = vmatmul.msk.bf16.vlgmr.msrb.gmra.mxu0 %vm741_vm0, %v2409_v48  ;;  %v1857_v48 = vor.u32 %v2122_v18, %v1856_v63  ;;  %v1933_v63 = vor.u32 %v2139_v15, %v1930_v37 }
  0x8a   :  { %1176 = vmatpush.bf16.msra.mxu0 %v1853_v25 }
  0x8b   :  { %1147 = vmatpush.bf16.msrb.mxu1 %v1857_v48  ;;  %1188 = vmatpush.bf16.msra.mxu2 %v1933_v63  ;;  %v1920_v48 = vld [vmem:[#allocation8 + $0xd0] sm:$0xf] }
  0x8c   :  { %v1921_v22 = vor.u32 %v2138_v19, %v1920_v48 }
  0x8e   :  { %1177 = vmatpush.bf16.msra.mxu0 %v1845_v31  ;;  %1161 = vmatpush.bf16.msrb.mxu3 %v1921_v22  ;;  %v2135_v31 = vld [vmem:[#allocation8 + $0xc4] sm:$0xf] }
  0x8f   :  { %1148 = vmatpush.bf16.msrb.mxu1 %v1849_v23  ;;  %v1922_v23 = vld [vmem:[#allocation8 + $0xd8] sm:$0xf0]  ;;  %v1917_v34 = vor.u32 %v2135_v31, %v1914_v32 }
  0x90   :  { %v1925_v24 = vor.u32 %v2137_v20, %v1922_v23 }
  0x92   :  { %1178 = vmatpush.bf16.msra.mxu0 %v1837_v38  ;;  %1189 = vmatpush.bf16.msra.mxu2 %v1925_v24 }
  0x93   :  { %1149 = vmatpush.bf16.msrb.mxu1 %v1841_v29  ;;  %1162 = vmatpush.bf16.msrb.mxu3 %v1913_v30 }
  0x96   :  { %1179 = vmatpush.bf16.msra.mxu0 %v1829_v45  ;;  %1190 = vmatpush.bf16.msra.mxu2 %v1917_v34  ;;  %v1906_v45 = vld [vmem:[#allocation8 + $0xb8] sm:$0xf0] }
  0x97   :  { %1150 = vmatpush.bf16.msrb.mxu1 %v1833_v35  ;;  %1163 = vmatpush.bf16.msrb.mxu3 %v1905_v43  ;;  %v2155_v43 = vld [vmem:[#allocation10 + $0x60] sm:$0xff] }
  0x9a   :  { %1180 = vmatpush.bf16.msra.mxu0 %v1821_v57  ;;  %v1898_v57 = vld [vmem:[#allocation8 + $0xa8] sm:$0xf0] }
  0x9b   :  { %1151 = vmatpush.bf16.msrb.mxu1 %v1825_v42  ;;  %v2133_v42 = vld [vmem:[#allocation8 + $0xb4] sm:$0xf] }
  0x9f   :  { %1152 = vmatpush.bf16.msrb.mxu1 %v1817_v53  ;;  %v2132_v53 = vld [vmem:[#allocation8 + $0xa4] sm:$0xf0] }
  0xa0   :  { %v1897_v55 = vor.u32 %v2132_v53, %v1896_v52  ;;  %v2152_v52 = vld [vmem:[#allocation10 + $0x48] sm:$0xff]  ;;  %v2143_v53 = vld [vmem:[#allocation10] sm:$0xff] }
  0xa2   :  { %1164 = vmatpush.bf16.msrb.mxu3 %v1897_v55  ;;  %v2151_v55 = vld [vmem:[#allocation10 + $0x40] sm:$0xff] }
  0xb6   :  { %v754_v47 = vpop.f32.mrf.mxu0 }
  0xb7   :  { %v755_v59 = vadd.f32 %v754_v47, %v212_v58 }
  0xb9   :  { %v768_v56 = vpop.f32.mrf.mxu1 }
  0xba   :  { %v769_v0 = vadd.f32 %v768_v56, %v755_v59  ;;  %v2131_v56 = vld [vmem:[#allocation8 + $0xa4] sm:$0xf] }
  0xbb   :  { %v1901_v59 = vor.u32 %v2131_v56, %v1898_v57 }
  0xbd   :  { %v782_v49 = vpop.f32.mrf.mxu2 }
  0xbe   :  { %v756_v61 = vpop.f32.mrf.mxu0  ;;  %v796_v1 = vpop.f32.mrf.mxu3  ;;  %v783_v10 = vadd.f32 %v782_v49, %v769_v0  ;;  %v1909_v49 = vor.u32 %v2133_v42, %v1906_v45  ;;  %v2130_v0 = vld [vmem:[#allocation8 + $0x94] sm:$0xf0]  ;;  %v2147_v42 = vld [vmem:[#allocation10 + $0x20] sm:$0xff] }
  0xbf   :  { %v757_v3 = vadd.f32 %v756_v61, %v212_v58  ;;  %v2146_v45 = vld [vmem:[#allocation10 + $0x18] sm:$0xff] }
  0xc0   :  { %v797_v4 = vadd.f32 %v796_v1, %v783_v10  ;;  %1191 = vmatpush.bf16.msra.mxu2 %v1909_v49  ;;  %v2129_v1 = vld [vmem:[#allocation8 + $0x94] sm:$0xf]  ;;  %v1881_v10 = vor.u32 %v2128_v8, %v1880_v7 }
  0xc1   :  { %v770_v2 = vpop.f32.mrf.mxu1  ;;  %v2145_v49 = vld [vmem:[#allocation10 + $0x10] sm:$0xff] }
  0xc2   :  { %v771_v12 = vadd.f32 %v770_v2, %v757_v3  ;;  %v1890_v3 = vld [vmem:[#allocation8 + $0x98] sm:$0xf0] }
  0xc3   :  { %v1893_v6 = vor.u32 %v2129_v1, %v1890_v3 }
  0xc4   :  { %1192 = vmatpush.bf16.msra.mxu2 %v1901_v59 }
  0xc5   :  { %v784_v62 = vpop.f32.mrf.mxu2 }
  0xc6   :  { %v785_v44 = vadd.f32 %v784_v62, %v771_v12  ;;  %v798_v21 = vpop.f32.mrf.mxu3  ;;  %v1888_v62 = vld [vmem:[#allocation8 + $0x90] sm:$0xf]  ;;  %v1885_v12 = vor.u32 %v2127_v9, %v1882_v11 }
  0xc7   :  { %v1889_v2 = vor.u32 %v2130_v0, %v1888_v62 }
  0xc8   :  { %v799_v25 = vadd.f32 %v798_v21, %v785_v44  ;;  %1193 = vmatpush.bf16.msra.mxu2 %v1893_v6 }
  0xc9   :  { %1165 = vmatpush.bf16.msrb.mxu3 %v1889_v2 }
  0xcc   :  { %1194 = vmatpush.bf16.msra.mxu2 %v1885_v12 }
  0xcd   :  { %v838_v17 = vpop.f32.mrf.mxu2  ;;  %1166 = vmatpush.bf16.msrb.mxu3 %v1881_v10 }
  0xd5   :  { %v840_v36 = vpop.f32.mrf.mxu2 }
  0xd6   :  { %v810_v16 = vpop.f32.mrf.mxu0 }
  0xd7   :  { %v811_v60 = vadd.f32 %v810_v16, %v797_v4 }
  0xd9   :  { %v824_v18 = vpop.f32.mrf.mxu1 }
  0xda   :  { %v825_v26 = vadd.f32 %v824_v18, %v811_v60 }
  0xdc   :  { %v839_v38 = vadd.f32 %v838_v17, %v825_v26 }
  0xde   :  { %v812_v29 = vpop.f32.mrf.mxu0  ;;  %v941_v50 = vmax.f32 %v839_v38, 0.0  ;;  %v852_v61 = vpop.f32.mrf.mxu3  ;;  %v2149_v38 = vld [vmem:[#allocation10 + $0x30] sm:$0xff] }
  0xdf   :  { %v813_v33 = vadd.f32 %v812_v29, %v799_v25  ;;  %v853_v17 = vadd.f32 %v852_v61, %v213_v13 }
  0xe1   :  { %v826_v35 = vpop.f32.mrf.mxu1  ;;  %v866_v5 = vpop.f32.mrf.mxu2 }
  0xe2   :  { %v827_v39 = vadd.f32 %v826_v35, %v813_v33  ;;  %v867_v37 = vadd.f32 %v866_v5, %v853_v17  ;;  %v2150_v35 = vld [vmem:[#allocation10 + $0x38] sm:$0xff] }
  0xe3   :  { %1339 = vmatpush.bf16.msra.mxu1 %v2150_v35 }
  0xe4   :  { %v841_v47 = vadd.f32 %v840_v36, %v827_v39  ;;  %v2158_v36 = vld [vmem:[#allocation10 + $0x78] sm:$0xff]  ;;  %v2157_v39 = vld [vmem:[#allocation10 + $0x70] sm:$0xff] }
  0xe5   :  { %1353 = vmatpush.bf16.msra.mxu3 %v2158_v36 }
  0xe6   :  { %v943_v51 = vmax.f32 %v841_v47, 0.0  ;;  %v854_v14 = vpop.f32.mrf.mxu3  ;;  %v2154_v47 = vld [vmem:[#allocation10 + $0x58] sm:$0xff] }
  0xe7   :  { %v855_v4 = vadd.f32 %v854_v14, %v213_v13  ;;  %1340 = vmatpush.bf16.msra.mxu1 %v2149_v38 }
  0xe8   :  { %v945_v58 = vpack.c.bf16 %v943_v51, %v941_v50  ;;  %v2153_v50 = vld [vmem:[#allocation10 + $0x50] sm:$0xff]  ;;  %v2144_v51 = vld [vmem:[#allocation10 + $0x8] sm:$0xff] }
  0xe9   :  { %v868_v16 = vpop.f32.mrf.mxu2  ;;  %1354 = vmatpush.bf16.msra.mxu3 %v2157_v39 }
  0xea   :  { %1153 = vmatmul.bf16.vlgmr.msrb.gmra.mxu1 %v945_v58  ;;  %1181 = vmatmul.bf16.vlgmr.msra.gmra.mxu0 %v945_v58  ;;  %v869_v60 = vadd.f32 %v868_v16, %v855_v4  ;;  %v979_v58 = vld [vmem:[%s2447_s4] sm:$0x3] }
  0xeb   :  { %1341 = vmatpush.bf16.msra.mxu1 %v2148_v40  ;;  %v981_v62 = vperm.slane %v979_v58, 0  ;;  %v982_v0 = vperm.slane %v979_v58, 1 }
  0xed   :  { %1355 = vmatpush.bf16.msra.mxu3 %v2156_v41 }
  0xef   :  { %1342 = vmatpush.bf16.msra.mxu1 %v2147_v42 }
  0xf1   :  { %1356 = vmatpush.bf16.msra.mxu3 %v2155_v43 }
  0xf3   :  { %1343 = vmatpush.bf16.msra.mxu1 %v2146_v45 }
  0xf5   :  { %1357 = vmatpush.bf16.msra.mxu3 %v2154_v47 }
  0xf6   :  { %v880_v15 = vpop.f32.mrf.mxu0 }
  0xf7   :  { %v881_v48 = vadd.f32 %v880_v15, %v867_v37  ;;  %1344 = vmatpush.bf16.msra.mxu1 %v2145_v49 }
  0xf9   :  { %v894_v54 = vpop.f32.mrf.mxu1  ;;  %1358 = vmatpush.bf16.msra.mxu3 %v2153_v50 }
  0xfa   :  { %v895_v21 = vadd.f32 %v894_v54, %v881_v48 }
  0xfb   :  { %1345 = vmatpush.bf16.msra.mxu1 %v2144_v51 }
  0xfd   :  { %1359 = vmatpush.bf16.msra.mxu3 %v2152_v52 }
  0xfe   :  { %v908_v63 = vpop.f32.mrf.mxu3  ;;  %v882_v18 = vpop.f32.mrf.mxu0 }
  0xff   :  { %v883_v19 = vadd.f32 %v882_v18, %v869_v60  ;;  %v909_v24 = vadd.f32 %v908_v63, %v895_v21  ;;  %1346 = vmatpush.bf16.msra.mxu1 %v2143_v53  ;;  %v2171_v63 = vld [vmem:[%s2449_s6] ss:$0 sm:$0xff] }
 0x101   :  { %v922_v44 = vpop.f32.mrf.mxu2  ;;  %v896_v20 = vpop.f32.mrf.mxu1  ;;  %1360 = vmatpush.bf16.msra.mxu3 %v2151_v55 }
 0x102   :  { %v897_v46 = vadd.f32 %v896_v20, %v883_v19  ;;  %v923_v27 = vadd.f32 %v922_v44, %v909_v24 }
 0x106   :  { %v910_v22 = vpop.f32.mrf.mxu3  ;;  %v936_v23 = vpop.f32.mrf.mxu0 }
 0x107   :  { %v911_v25 = vadd.f32 %v910_v22, %v897_v46  ;;  %v937_v28 = vadd.f32 %v936_v23, %v923_v27 }
 0x109   :  { %v924_v26 = vpop.f32.mrf.mxu2  ;;  %v942_v32 = vmax.f32 %v937_v28, 0.0 }
 0x10a   :  { %v925_v29 = vadd.f32 %v924_v26, %v911_v25 }
 0x10e   :  { %v938_v30 = vpop.f32.mrf.mxu0 }
 0x10f   :  { %v939_v31 = vadd.f32 %v938_v30, %v925_v29 }
 0x111   :  { %v944_v33 = vmax.f32 %v939_v31, 0.0 }
 0x113   :  { %v946_v34 = vpack.c.bf16 %v944_v33, %v942_v32 }
 0x115   :  { %1167 = vmatmul.bf16.vlgmr.msrb.gmra.mxu3 %v946_v34  ;;  %1195 = vmatmul.bf16.vlgmr.msra.gmra.mxu2 %v946_v34 }
 0x167   :  { %v1154_v56 = vpop.f32.mrf.mxu1  ;;  %v1182_v57 = vpop.f32.mrf.mxu0 }
 0x168   :  { %v1155_v3 = vadd.f32 %v1154_v56, %v981_v62  ;;  %v1183_v5 = vadd.f32 %v1182_v57, %v982_v0 }
 0x16f   :  { %v1156_v1 = vpop.f32.mrf.mxu1  ;;  %v1184_v2 = vpop.f32.mrf.mxu0 }
 0x170   :  { %v1157_v6 = vadd.f32 %v1156_v1, %v981_v62  ;;  %v1185_v7 = vadd.f32 %v1184_v2, %v982_v0 }
 0x198   :  { %v1168_v59 = vpop.f32.mrf.mxu3  ;;  %v1196_v61 = vpop.f32.mrf.mxu2 }
 0x199   :  { %v1169_v8 = vadd.f32 %v1168_v59, %v1155_v3  ;;  %v1197_v9 = vadd.f32 %v1196_v61, %v1183_v5 }
 0x19b   :  { %v1201_v14 = vmax.f32 %v1169_v8, 0.0  ;;  %v1202_v15 = vmax.f32 %v1197_v9, 0.0 }
 0x1a0   :  { %v1170_v10 = vpop.f32.mrf.mxu3  ;;  %v1198_v11 = vpop.f32.mrf.mxu2 }
 0x1a1   :  { %v1171_v12 = vadd.f32 %v1170_v10, %v1157_v6  ;;  %v1199_v13 = vadd.f32 %v1198_v11, %v1185_v7 }
 0x1a3   :  { %v1203_v16 = vmax.f32 %v1171_v12, 0.0  ;;  %v1204_v17 = vmax.f32 %v1199_v13, 0.0 }
 0x1a5   :  { %v1205_v54 = vpack.c.bf16 %v1203_v16, %v1201_v14  ;;  %v1206_v37 = vpack.c.bf16 %v1204_v17, %v1202_v15 }
 0x1a7   :  { %1347 = vmatmul.bf16.vlgmr.msra.gmra.mxu1 %v1205_v54  ;;  %1361 = vmatmul.bf16.vlgmr.msra.gmra.mxu3 %v1206_v37 }
 0x224   :  { %v1348_v4 = vpop.f32.mrf.mxu1 }
 0x225   :  { %v1349_v18 = vadd.f32 %v2171_v63, %v1348_v4 }
 0x22a   :  { %v1362_v44 = vpop.f32.mrf.mxu3 }
 0x22b   :  { %v1363_v60 = vadd.f32 %v1362_v44, %v1349_v18 }
 0x22c   :  { %v1350_v19 = vpop.f32.mrf.mxu1 }
 0x22d   :  { %v1367_v48 = vmax.f32 %v1363_v60, 0.0  ;;  %v1351_v20 = vadd.f32 %v2171_v63, %v1350_v19 }
 0x22f   :  { %1369 = vst [vmem:[#allocation11] sm:$0xff] %v1367_v48 }
 0x232   :  { %v1364_v21 = vpop.f32.mrf.mxu3 }
 0x233   :  { %v1365_v22 = vadd.f32 %v1364_v21, %v1351_v20 }
 0x235   :  { %v1368_v23 = vmax.f32 %v1365_v22, 0.0 }
 0x237   :  { %1370 = vst [vmem:[#allocation11 + $0x8] sm:$0xff] %v1368_v23 }
 0x238   :  { %1383 = dma.vmem_to_hbm [thread:$0]  %s1376_s8, 256, %s1378_s13, [#allocation4], %s2325_s9, %s2325_s9, %s2326_s10  }
 0x239   :  { %2322 = dma.done.wait [#allocation4], 256  }
 0x23a   :  { %2323 = vsyncadd [#allocation4], 4294967040 }
 0x23b   :  { %1388 = vsyncpa [#allocation3], 1 }
 0x23c   :  { %1389 = vsyncpa [#allocation6], 1 }
 0x23d   :  { %1390 = vsyncpa [#allocation9], 1 }
 0x23e   :  { %1391 = vsyncpa [#allocation4], 1 }

</bundles_post_ra>
